<compile_context>
chip_gen: v5e
topology: v5e:2x2
jax: 0.10.0
libtpu: 0.0.40
codegen_flags: <defaults>
</compile_context>

<pallas_src>
import functools

import jax
import jax.numpy as jnp
from jax.experimental import pallas as pl
from jax.experimental.pallas import tpu as pltpu


def _round_up(a, m):
    return ((a + m - 1) // m) * m


def _chungus_linear_kernel(x_ref, w_ref, b_ref, o_ref, acc_ref):
    """One grid step: (tm x tk) @ (tk x tn) accumulated into f32 scratch.

    Grid is (M tiles, N tiles, K tiles); K (reduction) is innermost and marked
    "arbitrary".  Bias is added in f32 at the final-K writeback (keeps the
    elementwise add off bf16 paths, good for v5e's VPU too).
    """
    k = pl.program_id(2)

    @pl.when(k == 0)
    def _():
        acc_ref[...] = jnp.zeros_like(acc_ref)

    acc_ref[...] += jnp.dot(
        x_ref[...], w_ref[...], preferred_element_type=jnp.float32
    )

    @pl.when(k == pl.num_programs(2) - 1)
    def _():
        o_ref[...] = (acc_ref[...] + b_ref[...]).astype(o_ref.dtype)


def chungus_forward(
    x,
    w,
    b,
    *,
    n_chungs,
    tm=256,
    tn=256,
    tk=512,
    compute_dtype=jnp.bfloat16,
):
    """Chungus(Linear(d_in, d_out), n_chungs).forward(x).

    x: [batch, seq, d_in]   w: [d_in, d_out]   b: [d_out]
    returns [batch, seq, d_out] in x.dtype.

    n_chungs has no effect on the forward math (torch.chunk -> module -> cat ==
    module(whole x) for a row-wise module); it is accepted for interface
    fidelity only.  Tiling is chosen from hardware constraints, not n_chungs.
    """
    del n_chungs  # forward-math invariant; see module docstring.

    batch, seq, d_in = x.shape
    d_out = w.shape[1]
    out_dtype = x.dtype
    rows = batch * seq

    # --- hardware-driven tile sizes (MXU/lane aligned, shape-robust) --------
    sub = 16  # sublane granularity covering both f32 (8) and bf16 (16)
    tm = _round_up(min(tm, _round_up(rows, sub)), sub)
    tn = _round_up(min(tn, _round_up(d_out, 128)), 128)
    tk = _round_up(min(tk, _round_up(d_in, 128)), 128)

    rows_p = _round_up(rows, tm)
    din_p = _round_up(d_in, tk)
    dout_p = _round_up(d_out, tn)

    # --- pad operands (zeros contribute nothing to the matmul) -------------
    x2 = x.reshape(rows, d_in).astype(compute_dtype)
    w2 = w.astype(compute_dtype)
    if (rows_p, din_p) != (rows, d_in):
        x2 = jnp.pad(x2, ((0, rows_p - rows), (0, din_p - d_in)))
    if (din_p, dout_p) != (d_in, d_out):
        w2 = jnp.pad(w2, ((0, din_p - d_in), (0, dout_p - d_out)))
    b2 = jnp.pad(b.astype(jnp.float32), (0, dout_p - d_out)).reshape(1, dout_p)

    grid_m = rows_p // tm
    grid_n = dout_p // tn
    grid_k = din_p // tk

    # --- explicit VMEM budget (fits v7x 64 MiB; headroom, no spills) --------
    comp_bytes = jnp.dtype(compute_dtype).itemsize
    out_bytes = jnp.dtype(out_dtype).itemsize
    vmem_est = (
        2 * (tm * tk + tk * tn) * comp_bytes  # double-buffered x / w tiles
        + 2 * tn * 4                          # double-buffered bias tile
        + 2 * tm * tn * out_bytes             # double-buffered output tile
        + tm * tn * 4                         # f32 accumulator scratch
    )
    vmem_limit = int(min(48 * 2**20, max(2 * vmem_est, 16 * 2**20)))

    cost = pl.CostEstimate(
        flops=2 * rows_p * din_p * dout_p,
        transcendentals=0,
        bytes_accessed=int(
            x2.size * comp_bytes
            + w2.size * comp_bytes
            + b2.size * 4
            + rows_p * dout_p * out_bytes
        ),
    )

    out2 = pl.pallas_call(
        _chungus_linear_kernel,
        out_shape=jax.ShapeDtypeStruct((rows_p, dout_p), out_dtype),
        grid_spec=pltpu.PrefetchScalarGridSpec(
            num_scalar_prefetch=0,
            grid=(grid_m, grid_n, grid_k),  # (row tiles, N tiles, K tiles)
            in_specs=[
                pl.BlockSpec((tm, tk), lambda i, j, k: (i, k)),   # x tile
                pl.BlockSpec((tk, tn), lambda i, j, k: (k, j)),   # w tile
                pl.BlockSpec((1, tn), lambda i, j, k: (0, j)),    # bias tile
            ],
            out_specs=pl.BlockSpec((tm, tn), lambda i, j, k: (i, j)),
            scratch_shapes=[pltpu.VMEM((tm, tn), jnp.float32)],
        ),
        compiler_params=pltpu.CompilerParams(
            dimension_semantics=("parallel", "parallel", "arbitrary"),
            vmem_limit_bytes=vmem_limit,
        ),
        cost_estimate=cost,
    )(x2, w2, b2)

    return out2[:rows, :d_out].reshape(batch, seq, d_out)


if __name__ == "__main__":
    # Small deterministic example — multiple K tiles plus N-padding to
    # exercise the accumulator and the lane-dense padded output path.
    batch, seq, d_in, d_out = 4, 16, 256, 160
    n_chungs = 2

    key = jax.random.PRNGKey(0)
    kx, kw, kb = jax.random.split(key, 3)
    x = jax.random.normal(kx, (batch, seq, d_in), dtype=jnp.float32)
    w = jax.random.normal(kw, (d_in, d_out), dtype=jnp.float32) / jnp.sqrt(d_in)
    b = jax.random.normal(kb, (d_out,), dtype=jnp.float32) * 0.01

    # Reference: chunk -> module -> cat == module applied to the whole input.
    ref = jnp.einsum("bsd,de->bse", x, w) + b

    # f32 compute path: bit-faithful to the torch Linear semantics.
    fwd_f32 = jax.jit(
        functools.partial(
            chungus_forward,
            n_chungs=n_chungs,
            tm=64, tn=128, tk=128,
            compute_dtype=jnp.float32,
        )
    )
    out_f32 = jax.block_until_ready(fwd_f32(x, w, b))
    assert out_f32.shape == (batch, seq, d_out)
    assert out_f32.dtype == x.dtype
    assert jnp.allclose(out_f32, ref, atol=1e-4, rtol=1e-4)

    # bf16 MXU path (default) — what you'd run at real d_model scales.
    fwd_bf16 = jax.jit(
        functools.partial(
            chungus_forward,
            n_chungs=n_chungs,
            tm=64, tn=128, tk=128,
        )
    )
    out_bf16 = jax.block_until_ready(fwd_bf16(x, w, b))
    assert out_bf16.shape == (batch, seq, d_out)
    assert jnp.allclose(out_bf16, ref, atol=7.5e-2, rtol=5e-2)

    print("KERNEL_OK")
</pallas_src>

<mosaic_0001>
module attributes {stable_mosaic.version = 11 : i64} {
  func.func @_chungus_linear_kernel(%arg0: i32, %arg1: i32, %arg2: i32, %arg3: memref<64x128xf32, #tpu.memory_space<vmem>>, %arg4: memref<128x128xf32, #tpu.memory_space<vmem>>, %arg5: memref<1x128xf32, #tpu.memory_space<vmem>>, %arg6: memref<64x128xf32, #tpu.memory_space<vmem>>, %arg7: memref<64x128xf32, #tpu.memory_space<vmem>>) attributes {dimension_semantics = [#tpu.dimension_semantics<parallel>, #tpu.dimension_semantics<parallel>, #tpu.dimension_semantics<arbitrary>], iteration_bounds = array<i64: 1, 2, 2>, scalar_prefetch = 0 : i64, scratch_operands = 1 : i64, tpu.core_type = #tpu.core_type<tc>, window_params = [{transform_indices = @transform_0, window_bounds = array<i64: 64, 128>}, {transform_indices = @transform_1, window_bounds = array<i64: 128, 128>}, {transform_indices = @transform_2, window_bounds = array<i64: 1, 128>}, {transform_indices = @transform_3, window_bounds = array<i64: 64, 128>}]} {
    %c0_i32 = arith.constant 0 : i32
    %0 = arith.cmpi eq, %arg2, %c0_i32 : i32
    %1 = arith.extui %0 : i1 to i32
    %c0_i32_0 = arith.constant 0 : i32
    %2 = arith.cmpi ne, %1, %c0_i32_0 : i32
    scf.if %2 {
      %cst_9 = arith.constant 0.000000e+00 : f32
      %12 = vector.broadcast %cst_9 : f32 to vector<64x128xf32>
      %c0_10 = arith.constant 0 : index
      %c0_11 = arith.constant 0 : index
      %13 = vector.load %arg7[%c0_10, %c0_11] : memref<64x128xf32, #tpu.memory_space<vmem>>, vector<64x128xf32>
      tpu.vector_store %arg7[%c0_10, %c0_11], %12 {strides = array<i32>} : memref<64x128xf32, #tpu.memory_space<vmem>>, vector<64x128xf32>,
    } else {
    }
    %c0 = arith.constant 0 : index
    %c0_1 = arith.constant 0 : index
    %3 = vector.load %arg7[%c0, %c0_1] : memref<64x128xf32, #tpu.memory_space<vmem>>, vector<64x128xf32>
    %c0_2 = arith.constant 0 : index
    %c0_3 = arith.constant 0 : index
    %4 = vector.load %arg3[%c0_2, %c0_3] : memref<64x128xf32, #tpu.memory_space<vmem>>, vector<64x128xf32>
    %c0_4 = arith.constant 0 : index
    %c0_5 = arith.constant 0 : index
    %5 = vector.load %arg4[%c0_4, %c0_5] : memref<128x128xf32, #tpu.memory_space<vmem>>, vector<128x128xf32>
    %cst = arith.constant dense<0.000000e+00> : vector<64x128xf32>
    %6 = tpu.matmul %4, %5, %cst {dimension_numbers = #tpu.dot_dimension_numbers<[1], [0], [0], [1], [0, 0, 1, 1], [], []>} : vector<64x128xf32>, vector<128x128xf32>, vector<64x128xf32> -> vector<64x128xf32>
    %7 = arith.addf %3, %6 : vector<64x128xf32>
    %c0_6 = arith.constant 0 : index
    %c0_7 = arith.constant 0 : index
    %8 = vector.load %arg7[%c0_6, %c0_7] : memref<64x128xf32, #tpu.memory_space<vmem>>, vector<64x128xf32>
    tpu.vector_store %arg7[%c0_6, %c0_7], %7 {strides = array<i32>} : memref<64x128xf32, #tpu.memory_space<vmem>>, vector<64x128xf32>,
    %c1_i32 = arith.constant 1 : i32
    %9 = arith.cmpi eq, %arg2, %c1_i32 : i32
    %10 = arith.extui %9 : i1 to i32
    %c0_i32_8 = arith.constant 0 : i32
    %11 = arith.cmpi ne, %10, %c0_i32_8 : i32
    scf.if %11 {
      %c0_9 = arith.constant 0 : index
      %c0_10 = arith.constant 0 : index
      %12 = vector.load %arg7[%c0_9, %c0_10] : memref<64x128xf32, #tpu.memory_space<vmem>>, vector<64x128xf32>
      %c0_11 = arith.constant 0 : index
      %c0_12 = arith.constant 0 : index
      %13 = vector.load %arg5[%c0_11, %c0_12] : memref<1x128xf32, #tpu.memory_space<vmem>>, vector<1x128xf32>
      %14 = vector.broadcast %13 : vector<1x128xf32> to vector<64x128xf32>
      %15 = arith.addf %12, %14 : vector<64x128xf32>
      %c0_13 = arith.constant 0 : index
      %c0_14 = arith.constant 0 : index
      %16 = vector.load %arg6[%c0_13, %c0_14] : memref<64x128xf32, #tpu.memory_space<vmem>>, vector<64x128xf32>
      tpu.vector_store %arg6[%c0_13, %c0_14], %15 {strides = array<i32>} : memref<64x128xf32, #tpu.memory_space<vmem>>, vector<64x128xf32>,
    } else {
    }
    return
  }
  func.func @transform_0(%arg0: i32, %arg1: i32, %arg2: i32) -> (i32, i32) {
    %c0_i32 = arith.constant 0 : i32
    return %arg0, %arg2 : i32, i32
  }
  func.func @transform_1(%arg0: i32, %arg1: i32, %arg2: i32) -> (i32, i32) {
    %c0_i32 = arith.constant 0 : i32
    return %arg2, %arg1 : i32, i32
  }
  func.func @transform_2(%arg0: i32, %arg1: i32, %arg2: i32) -> (i32, i32) {
    %c0_i32 = arith.constant 0 : i32
    %c0_i32_0 = arith.constant 0 : i32
    return %c0_i32, %arg1 : i32, i32
  }
  func.func @transform_3(%arg0: i32, %arg1: i32, %arg2: i32) -> (i32, i32) {
    %c0_i32 = arith.constant 0 : i32
    return %arg0, %arg1 : i32, i32
  }
}

</mosaic_0001>

<bundles_post_ra>
// kernel: chungus_forward.1
= control target key start
LH: loop header
LB: loop body
LE: loop exit
PB: predicated region body
PF: predicated region fallthrough
CT: control target
= control target key end

     0   :  { %s1251_s0 = inlined_call_operand.vmem [shape: f32[64,256], index: 0, kind: input, shape index: {}]   ;;  %s1252_s1 = inlined_call_operand.vmem [shape: f32[256,256], index: 1, kind: input, shape index: {}]   ;;  %s1253_s2 = inlined_call_operand.vmem [shape: f32[1,256], index: 2, kind: input, shape index: {}]   ;;  %s1254_s3 = inlined_call_operand.hbm [shape: f32[64,256], index: 3, kind: output, shape index: {}]  }
   0x1   :  { %1258 = sst [smem:[#allocation11_spill]] %s1251_s0 }
   0x2   :  { %1259 = sst [smem:[#allocation12_spill]] %s1252_s1 }
   0x3   :  { %8 = vsyncpa [#allocation6], 0 }
   0x4   :  { %10 = vsyncpa [#allocation6 + $0x1], 0  ;;  %s990_s12 = smov 0   ;;  %s992_s13 = smov 0  }
   0x5   :  { %s994_s14 = smov 0   ;;  %s996_s15 = smov 0  }
   0x6   :  { %s998_s16 = smov 0   ;;  %s1000_s17 = smov 0  }
   0x7   :  { %s1002_s18 = smov 0   ;;  %s1004_s19 = smov 0  }
   0x8   :  { %s1006_s20 = smov 0   ;;  %s1008_s21 = smov 0  }
   0x9   :  { %s1010_s22 = smov 0   ;;  %s1012_s23 = smov 0  }
   0xa LB: > { %1260 = sst [smem:[#allocation8_spill]] %s960_s22  ;;  %s661_s24 = sadd.s32 4294967295, %s964_s23   ;;  %s964_s23 = sphi %s1012_s23, %s16_s23   ;;  %s960_s22 = sphi %s1010_s22, %s1271_s22   ;;  %s956_s21 = sphi %s1008_s21, %s1280_s21   ;;  %s952_s20 = sphi %s1006_s20, %s1269_s20   ;;  %s948_s19 = sphi %s1004_s19, %s1279_s19   ;;  %s944_s18 = sphi %s1002_s18, %s1278_s18   ;;  %s940_s17 = sphi %s1000_s17, %s1277_s17   ;;  %s936_s16 = sphi %s998_s16, %s1276_s16   ;;  %s932_s15 = sphi %s996_s15, %s1275_s15   ;;  %s928_s14 = sphi %s994_s14, %s1274_s14   ;;  %s924_s13 = sphi %s992_s13, %s1273_s13   ;;  %s920_s12 = sphi %s990_s12, %s1272_s12  }
   0xb   : > { %s662_s25 = sadd.s32 4294967294, %s964_s23   ;;  %s28_s26 = sadd.s32 1, %s956_s21 }
   0xc   : > { %s31_s27 = sadd.s32 1, %s960_s22  ;;  %p29_p0 = scmp.ge.s32.totalorder %s28_s26, 2 }
   0xd   : > { %s44_s28 = sadd.s32 1, %s944_s18  ;;  %p51_p1 = scmp.ne.s32.totalorder %s944_s18, %s940_s17 }
   0xe   : > { %p52_p2 = scmp.eq.s32.totalorder %s964_s23, 0  ;;  %s1282_s26 = smov (%p29_p0, %s28_s26), 0 }
   0xf   : > { %1261 = sst [smem:[#allocation9_spill]] %s1282_s26  ;;  %s1284_s27 = smov (!%p29_p0, %s31_s27), %s960_s22 }
  0x10   : > { %s40_s29 = ssub.s32 %s956_s21, %s1282_s26  ;;  %p1063_p3 = por %p52_p2, %p51_p1 }
  0x11   : > { %p33_p4 = scmp.ge.s32.totalorder %s1284_s27, 2  ;;  %p42_p5 = scmp.eq.s32.totalorder %s40_s29, 0 }
  0x12   : > { %s72_s4 = sadd.s32 1, %s936_s16  ;;  %p79_p6 = scmp.ne.s32.totalorder %s936_s16, %s932_s15 }
  0x13   : > { %s1286_s27 = smov (%p33_p4, %s1284_s27), 0  ;;  %s126_s9 = sadd.s32 1, %s928_s14 }
  0x14   : > { %1263 = sst [smem:[#allocation10_spill]] %s1286_s27  ;;  %s68_s6 = ssub.s32 %s960_s22, %s1286_s27 }
  0x15   : > { %s1073_s5 = scalar_select %p42_p5, %s944_s18, %s44_s28  }
  0x16   : > { %p1077_p7 = por %p79_p6, %p52_p2  ;;  %s69_s8 = sor.u32 %s68_s6, %s40_s29 }
  0x17   : > { %p124_p8 = scmp.eq.s32.totalorder %s68_s6, 0  ;;  %p70_p9 = scmp.eq.s32.totalorder %s69_s8, 0 }
  0x18   : > { %p136_p10 = scmp.ne.s32.totalorder %s928_s14, %s924_s13  ;;  %p137_p11 = scmp.eq.s32.totalorder %s661_s24, 3 }
  0x19   : > { %s1083_s10 = scalar_select %p124_p8, %s928_s14, %s126_s9  }
  0x1a   : > { %s1086_s11 = scalar_select %p70_p9, %s936_s16, %s72_s4  }
  0x1b   : > { %p142_p12 = scmp.ne.s32.totalorder %s924_s13, %s920_s12  ;;  %p143_p13 = scmp.eq.s32.totalorder %s662_s25, 3 }
  0x1c   : > { %p1092_p0 = por %p137_p11, %p136_p10  ;;  %p664_p2 = scmp.ge.s32.totalorder %s964_s23, 4 }
  0x1d   : > { %p1096_p1 = por %p143_p13, %p142_p12 }
  0x1e   : > { %159 = sbr.rel (%p664_p2) target bundleno = 79 (0x4f), region = 16 }
  0x23   : > { %162 = sbr.rel (!%p1063_p3) target bundleno = 53 (0x35), region = 20  ;;  %s164_s29 = sand.u32 (%p1063_p3), 1, %s944_s18  }
  0x24   : > { %s666_s24 = sshll.u32 (%p1063_p3), %s956_s21, 3  ;;  %s665_s4 = sshll.u32 (%p1063_p3), %s164_s29, 6 }
  0x25   : > { %s1267_s0 = sld [smem:[#allocation11_spill]] (%p1063_p3)  ;;  %s166_s9 = scalar_lea.vmem (%p1063_p3), [#allocation3], %s665_s4 }
  0x2b   : > { %s171_s8 = scalar_lea.vmem %s1267_s0, %s666_s24 }
  0x2c   : > { %v214_v0 = vld [vmem:[%s171_s8] sm:$0xff]  ;;  %v216_v1 = vld [vmem:[%s171_s8 + $0x10] sm:$0xff] }
  0x2d   : > { %v218_v2 = vld [vmem:[%s171_s8 + $0x20] sm:$0xff]  ;;  %215 = vst [vmem:[%s166_s9] sm:$0xff] %v214_v0  ;;  %v220_v3 = vld [vmem:[%s171_s8 + $0x30] sm:$0xff] }
  0x2e   : > { %217 = vst [vmem:[%s166_s9 + $0x8] sm:$0xff] %v216_v1  ;;  %v222_v4 = vld [vmem:[%s171_s8 + $0x40] sm:$0xff]  ;;  %v224_v5 = vld [vmem:[%s171_s8 + $0x50] sm:$0xff] }
  0x2f   : > { %219 = vst [vmem:[%s166_s9 + $0x10] sm:$0xff] %v218_v2  ;;  %v226_v6 = vld [vmem:[%s171_s8 + $0x60] sm:$0xff]  ;;  %v228_v7 = vld [vmem:[%s171_s8 + $0x70] sm:$0xff] }
  0x30   : > { %221 = vst [vmem:[%s166_s9 + $0x18] sm:$0xff] %v220_v3 }
  0x31   : > { %223 = vst [vmem:[%s166_s9 + $0x20] sm:$0xff] %v222_v4 }
  0x32   : > { %225 = vst [vmem:[%s166_s9 + $0x28] sm:$0xff] %v224_v5 }
  0x33   : > { %227 = vst [vmem:[%s166_s9 + $0x30] sm:$0xff] %v226_v6 }
  0x34   : > { %229 = vst [vmem:[%s166_s9 + $0x38] sm:$0xff] %v228_v7 }
  0x35 PF: > { %235 = sbr.rel (!%p1077_p7) target bundleno = 79 (0x4f), region = 58  ;;  %s237_s30 = sand.u32 (%p1077_p7), 1, %s936_s16  }
  0x36   : > { %s681_s29 = sshll.u32 (%p1077_p7), %s956_s21, 5  ;;  %s667_s24 = sshll.u32 (%p1077_p7), %s237_s30, 7 }
  0x37   : > { %s242_s4 = sadd.s32 (%p1077_p7), %s960_s22, %s681_s29  ;;  %s1268_s1 = sld [smem:[#allocation12_spill]] (%p1077_p7) }
  0x38   : > { %s670_s25 = sshll.u32 (%p1077_p7), %s242_s4, 3  ;;  %s239_s7 = scalar_lea.vmem (%p1077_p7), [#allocation4], %s667_s24 }
  0x3d   : > { %s1116_s26 = scalar_lea.vmem %s1268_s1, %s670_s25 }
  0x3e   : > { %v303_v8 = vld [vmem:[%s1116_s26] sm:$0xff]  ;;  %v305_v9 = vld [vmem:[%s1116_s26 + $0x10] sm:$0xff] }
  0x3f   : > { %v307_v10 = vld [vmem:[%s1116_s26 + $0x20] sm:$0xff]  ;;  %304 = vst [vmem:[%s239_s7] sm:$0xff] %v303_v8  ;;  %v309_v11 = vld [vmem:[%s1116_s26 + $0x30] sm:$0xff] }
  0x40   : > { %306 = vst [vmem:[%s239_s7 + $0x8] sm:$0xff] %v305_v9  ;;  %v311_v12 = vld [vmem:[%s1116_s26 + $0x40] sm:$0xff]  ;;  %v313_v13 = vld [vmem:[%s1116_s26 + $0x50] sm:$0xff] }
  0x41   : > { %308 = vst [vmem:[%s239_s7 + $0x10] sm:$0xff] %v307_v10  ;;  %v315_v14 = vld [vmem:[%s1116_s26 + $0x60] sm:$0xff]  ;;  %v317_v15 = vld [vmem:[%s1116_s26 + $0x70] sm:$0xff] }
  0x42   : > { %310 = vst [vmem:[%s239_s7 + $0x18] sm:$0xff] %v309_v11  ;;  %v319_v16 = vld [vmem:[%s1116_s26 + $0x80] sm:$0xff]  ;;  %v321_v17 = vld [vmem:[%s1116_s26 + $0x90] sm:$0xff] }
  0x43   : > { %312 = vst [vmem:[%s239_s7 + $0x20] sm:$0xff] %v311_v12  ;;  %v323_v18 = vld [vmem:[%s1116_s26 + $0xa0] sm:$0xff]  ;;  %v325_v19 = vld [vmem:[%s1116_s26 + $0xb0] sm:$0xff] }
  0x44   : > { %314 = vst [vmem:[%s239_s7 + $0x28] sm:$0xff] %v313_v13  ;;  %v327_v20 = vld [vmem:[%s1116_s26 + $0xc0] sm:$0xff]  ;;  %v329_v21 = vld [vmem:[%s1116_s26 + $0xd0] sm:$0xff] }
  0x45   : > { %316 = vst [vmem:[%s239_s7 + $0x30] sm:$0xff] %v315_v14  ;;  %v331_v22 = vld [vmem:[%s1116_s26 + $0xe0] sm:$0xff]  ;;  %v333_v23 = vld [vmem:[%s1116_s26 + $0xf0] sm:$0xff] }
  0x46   : > { %318 = vst [vmem:[%s239_s7 + $0x38] sm:$0xff] %v317_v15 }
  0x47   : > { %320 = vst [vmem:[%s239_s7 + $0x40] sm:$0xff] %v319_v16 }
  0x48   : > { %322 = vst [vmem:[%s239_s7 + $0x48] sm:$0xff] %v321_v17 }
  0x49   : > { %324 = vst [vmem:[%s239_s7 + $0x50] sm:$0xff] %v323_v18 }
  0x4a   : > { %326 = vst [vmem:[%s239_s7 + $0x58] sm:$0xff] %v325_v19 }
  0x4b   : > { %328 = vst [vmem:[%s239_s7 + $0x60] sm:$0xff] %v327_v20 }
  0x4c   : > { %330 = vst [vmem:[%s239_s7 + $0x68] sm:$0xff] %v329_v21 }
  0x4d   : > { %332 = vst [vmem:[%s239_s7 + $0x70] sm:$0xff] %v331_v22 }
  0x4e   : > { %334 = vst [vmem:[%s239_s7 + $0x78] sm:$0xff] %v333_v23 }
  0x4f PF: > { %p671_p3 = scmp.ge.s32.totalorder %s964_s23, 1  ;;  %p345_p4 = scmp.lt.s32.totalorder %s964_s23, 5 }
  0x51   : > { %p346_p5 = pnand %p671_p3, %p345_p4 }
  0x52   : > { %s352_s0 = sand.u32 (!%p346_p5), 1, %s940_s17   ;;  %s359_s8 = sand.u32 (!%p346_p5), 1, %s932_s15  }
  0x53   : > { %349 = sbr.rel (%p346_p5) target bundleno = 307 (0x133), region = 100  ;;  %s672_s26 = sshll.u32 (!%p346_p5), %s352_s0, 6 }
  0x54   : > { %s673_s9 = sshll.u32 (!%p346_p5), %s359_s8, 7  ;;  %s386_s30 = sand.u32 (!%p346_p5), 1, %s924_s13  }
  0x55   : > { %p391_p6 = scmp.lt.s32.totalorder (!%p346_p5), %s952_s20, 1  ;;  %s674_s29 = sshll.u32 (!%p346_p5), %s386_s30, 6 }
  0x56   : > { %s1149_s7 = scalar_lea.vmem (!%p346_p5), [#allocation3], %s672_s26  ;;  %s1151_s1 = scalar_lea.vmem (!%p346_p5), [#allocation4], %s673_s9 }
  0x57   : > { %s1153_s22 = scalar_lea.vmem (!%p346_p5), [#allocation5], %s674_s29  ;;  %p675_p7 = scmp.ne.s32.totalorder (!%p346_p5), %s948_s19, 0 }
  0x58   : > { %s1143_s24 = scalar_select %p391_p6, %s952_s20, 1 }
  0x59   : > { %398 = sbr.rel (%p675_p7) target bundleno = 103 (0x67), region = 112 }
  0x5a   : > { %s393_s6 = scalar_lea.vmem %s1253_s2, %s1143_s24 }
  0x5e   : > { %v966_v24 = vmov 0.0  }
  0x5f   : > { %399 = vst [vmem:[#allocation2 + $0x30] sm:$0xff] %v966_v24 }
  0x60   : > { %400 = vst [vmem:[#allocation2] sm:$0xff] %v966_v24 }
  0x61   : > { %401 = vst [vmem:[#allocation2 + $0x18] sm:$0xff] %v966_v24 }
  0x62   : > { %402 = vst [vmem:[#allocation2 + $0x10] sm:$0xff] %v966_v24 }
  0x63   : > { %403 = vst [vmem:[#allocation2 + $0x8] sm:$0xff] %v966_v24 }
  0x64   : > { %404 = vst [vmem:[#allocation2 + $0x20] sm:$0xff] %v966_v24 }
  0x65   : > { %405 = vst [vmem:[#allocation2 + $0x28] sm:$0xff] %v966_v24 }
  0x66   : > { %406 = vst [vmem:[#allocation2 + $0x38] sm:$0xff] %v966_v24 }
  0x67 PF: > { %v438_v25 = vld [vmem:[%s1151_s1 + $0x78] sm:$0xff]  ;;  %v437_v26 = vld [vmem:[%s1151_s1 + $0x70] sm:$0xff]  ;;  %v436_v27 = vld [vmem:[%s1151_s1 + $0x68] sm:$0xff]  ;;  %p676_p8 = scmp.ne.s32.totalorder %s948_s19, 1 }
  0x68   : > { %683 = vmatpush.msra.mxu2 %v438_v25  ;;  %684 = vmatpush.msra.mxu3 %v438_v25  ;;  %v435_v28 = vld [vmem:[%s1151_s1 + $0x60] sm:$0xff]  ;;  %v434_v29 = vld [vmem:[%s1151_s1 + $0x58] sm:$0xff]  ;;  %v433_v30 = vld [vmem:[%s1151_s1 + $0x50] sm:$0xff] }
  0x69   : > { %439 = vmatpush.msra.mxu0 %v438_v25  ;;  %682 = vmatpush.msra.mxu1 %v438_v25  ;;  %v432_v31 = vld [vmem:[%s1151_s1 + $0x48] sm:$0xff]  ;;  %v431_v32 = vld [vmem:[%s1151_s1 + $0x40] sm:$0xff]  ;;  %v430_v33 = vld [vmem:[%s1151_s1 + $0x38] sm:$0xff] }
  0x6a   : > { %686 = vmatpush.msra.mxu2 %v437_v26  ;;  %687 = vmatpush.msra.mxu3 %v437_v26  ;;  %v429_v34 = vld [vmem:[%s1151_s1 + $0x30] sm:$0xff]  ;;  %v428_v35 = vld [vmem:[%s1151_s1 + $0x28] sm:$0xff]  ;;  %v427_v36 = vld [vmem:[%s1151_s1 + $0x20] sm:$0xff] }
  0x6b   : > { %440 = vmatpush.msra.mxu0 %v437_v26  ;;  %685 = vmatpush.msra.mxu1 %v437_v26  ;;  %v426_v37 = vld [vmem:[%s1151_s1 + $0x18] sm:$0xff]  ;;  %v425_v38 = vld [vmem:[%s1151_s1 + $0x10] sm:$0xff]  ;;  %v424_v39 = vld [vmem:[%s1151_s1 + $0x8] sm:$0xff] }
  0x6c   : > { %689 = vmatpush.msra.mxu2 %v436_v27  ;;  %690 = vmatpush.msra.mxu3 %v436_v27  ;;  %v423_v40 = vld [vmem:[%s1151_s1] sm:$0xff]  ;;  %v421_v42 = vld [vmem:[%s1149_s7 + $0x30] sm:$0xff]  ;;  %v420_v45 = vld [vmem:[%s1149_s7 + $0x28] sm:$0xff] }
  0x6d   : > { %441 = vmatpush.msra.mxu0 %v436_v27  ;;  %688 = vmatpush.msra.mxu1 %v436_v27  ;;  %v419_v41 = vld [vmem:[%s1149_s7 + $0x20] sm:$0xff]  ;;  %v417_v44 = vld [vmem:[%s1149_s7 + $0x10] sm:$0xff]  ;;  %v422_v46 = vld [vmem:[%s1149_s7 + $0x38] sm:$0xff] }
  0x6e   : > { %692 = vmatpush.msra.mxu2 %v435_v28  ;;  %693 = vmatpush.msra.mxu3 %v435_v28  ;;  %v415_v43 = vld [vmem:[%s1149_s7] sm:$0xff]  ;;  %v416_v47 = vld [vmem:[%s1149_s7 + $0x8] sm:$0xff]  ;;  %v418_v48 = vld [vmem:[%s1149_s7 + $0x18] sm:$0xff] }
  0x6f   : > { %442 = vmatpush.msra.mxu0 %v435_v28  ;;  %691 = vmatpush.msra.mxu1 %v435_v28  ;;  %v407_v49 = vld [vmem:[#allocation2 + $0x30] sm:$0xff]  ;;  %v409_v50 = vld [vmem:[#allocation2 + $0x18] sm:$0xff]  ;;  %v411_v55 = vld [vmem:[#allocation2 + $0x8] sm:$0xff] }
  0x70   : > { %695 = vmatpush.msra.mxu2 %v434_v29  ;;  %696 = vmatpush.msra.mxu3 %v434_v29  ;;  %v413_v56 = vld [vmem:[#allocation2 + $0x28] sm:$0xff]  ;;  %v408_v61 = vld [vmem:[#allocation2] sm:$0xff]  ;;  %v410_v62 = vld [vmem:[#allocation2 + $0x10] sm:$0xff] }
  0x71   : > { %443 = vmatpush.msra.mxu0 %v434_v29  ;;  %694 = vmatpush.msra.mxu1 %v434_v29  ;;  %v412_v3 = vld [vmem:[#allocation2 + $0x20] sm:$0xff]  ;;  %v414_v4 = vld [vmem:[#allocation2 + $0x38] sm:$0xff] }
  0x72   : > { %698 = vmatpush.msra.mxu2 %v433_v30  ;;  %699 = vmatpush.msra.mxu3 %v433_v30 }
  0x73   : > { %444 = vmatpush.msra.mxu0 %v433_v30  ;;  %697 = vmatpush.msra.mxu1 %v433_v30 }
  0x74   : > { %701 = vmatpush.msra.mxu2 %v432_v31  ;;  %702 = vmatpush.msra.mxu3 %v432_v31 }
  0x75   : > { %445 = vmatpush.msra.mxu0 %v432_v31  ;;  %700 = vmatpush.msra.mxu1 %v432_v31 }
  0x76   : > { %704 = vmatpush.msra.mxu2 %v431_v32  ;;  %705 = vmatpush.msra.mxu3 %v431_v32 }
  0x77   : > { %446 = vmatpush.msra.mxu0 %v431_v32  ;;  %703 = vmatpush.msra.mxu1 %v431_v32 }
  0x78   : > { %707 = vmatpush.msra.mxu2 %v430_v33  ;;  %708 = vmatpush.msra.mxu3 %v430_v33 }
  0x79   : > { %447 = vmatpush.msra.mxu0 %v430_v33  ;;  %706 = vmatpush.msra.mxu1 %v430_v33 }
  0x7a   : > { %710 = vmatpush.msra.mxu2 %v429_v34  ;;  %711 = vmatpush.msra.mxu3 %v429_v34 }
  0x7b   : > { %448 = vmatpush.msra.mxu0 %v429_v34  ;;  %709 = vmatpush.msra.mxu1 %v429_v34 }
  0x7c   : > { %713 = vmatpush.msra.mxu2 %v428_v35  ;;  %714 = vmatpush.msra.mxu3 %v428_v35 }
  0x7d   : > { %449 = vmatpush.msra.mxu0 %v428_v35  ;;  %712 = vmatpush.msra.mxu1 %v428_v35 }
  0x7e   : > { %716 = vmatpush.msra.mxu2 %v427_v36  ;;  %717 = vmatpush.msra.mxu3 %v427_v36 }
  0x7f   : > { %450 = vmatpush.msra.mxu0 %v427_v36  ;;  %715 = vmatpush.msra.mxu1 %v427_v36 }
  0x80   : > { %719 = vmatpush.msra.mxu2 %v426_v37  ;;  %720 = vmatpush.msra.mxu3 %v426_v37 }
  0x81   : > { %451 = vmatpush.msra.mxu0 %v426_v37  ;;  %718 = vmatpush.msra.mxu1 %v426_v37 }
  0x82   : > { %722 = vmatpush.msra.mxu2 %v425_v38  ;;  %723 = vmatpush.msra.mxu3 %v425_v38 }
  0x83   : > { %452 = vmatpush.msra.mxu0 %v425_v38  ;;  %721 = vmatpush.msra.mxu1 %v425_v38 }
  0x84   : > { %725 = vmatpush.msra.mxu2 %v424_v39  ;;  %726 = vmatpush.msra.mxu3 %v424_v39 }
  0x85   : > { %453 = vmatpush.msra.mxu0 %v424_v39  ;;  %724 = vmatpush.msra.mxu1 %v424_v39 }
  0x86   : > { %728 = vmatpush.msra.mxu2 %v423_v40  ;;  %729 = vmatpush.msra.mxu3 %v423_v40 }
  0x87   : > { %467 = vmatmul.f32.vlgmr.msra.gmra.mxu2 %v419_v41  ;;  %473 = vmatmul.f32.vlgmr.msra.gmra.mxu3 %v421_v42 }
  0x88   : > { %454 = vmatpush.msra.mxu0 %v423_v40  ;;  %727 = vmatpush.msra.mxu1 %v423_v40 }
  0x89   : > { %455 = vmatmul.f32.vlgmr.msra.gmra.mxu0 %v415_v43  ;;  %461 = vmatmul.f32.vlgmr.msra.gmra.mxu1 %v417_v44 }
  0x8f   : > { %470 = vmatmul.f32.gmra.mxu2 %v420_v45  ;;  %476 = vmatmul.f32.gmra.mxu3 %v422_v46 }
  0x91   : > { %458 = vmatmul.f32.gmra.mxu0 %v416_v47  ;;  %464 = vmatmul.f32.gmra.mxu1 %v418_v48 }
 0x106   : > { %v456_v51 = vpop.f32.mrf.mxu0  ;;  %v462_v52 = vpop.f32.mrf.mxu1 }
 0x107   : > { %v480_v53 = vadd.f32 %v456_v51, %v407_v49  ;;  %v482_v54 = vadd.f32 %v462_v52, %v409_v50 }
 0x109   : > { %488 = vst [vmem:[#allocation2 + $0x30] sm:$0xff] %v480_v53 }
 0x10a   : > { %490 = vst [vmem:[#allocation2 + $0x18] sm:$0xff] %v482_v54  ;;  %v468_v57 = vpop.f32.mrf.mxu2  ;;  %v474_v58 = vpop.f32.mrf.mxu3 }
 0x10b   : > { %v484_v59 = vadd.f32 %v468_v57, %v411_v55  ;;  %v486_v60 = vadd.f32 %v474_v58, %v413_v56 }
 0x10d   : > { %492 = vst [vmem:[#allocation2 + $0x8] sm:$0xff] %v484_v59 }
 0x10e   : > { %494 = vst [vmem:[#allocation2 + $0x28] sm:$0xff] %v486_v60  ;;  %v459_v63 = vpop.f32.mrf.mxu0  ;;  %v465_v0 = vpop.f32.mrf.mxu1 }
 0x10f   : > { %v481_v1 = vadd.f32 %v459_v63, %v408_v61  ;;  %v483_v2 = vadd.f32 %v465_v0, %v410_v62 }
 0x111   : > { %489 = vst [vmem:[#allocation2] sm:$0xff] %v481_v1 }
 0x112   : > { %491 = vst [vmem:[#allocation2 + $0x10] sm:$0xff] %v483_v2  ;;  %v471_v5 = vpop.f32.mrf.mxu2  ;;  %v477_v6 = vpop.f32.mrf.mxu3  ;;  %499 = sbr.rel (%p676_p8) target bundleno = 290 (0x122), region = 116 }
 0x113   : > { %v485_v7 = vadd.f32 %v471_v5, %v412_v3  ;;  %v487_v8 = vadd.f32 %v477_v6, %v414_v4 }
 0x115   : > { %493 = vst [vmem:[#allocation2 + $0x20] sm:$0xff] %v485_v7 }
 0x116   : > { %495 = vst [vmem:[#allocation2 + $0x38] sm:$0xff] %v487_v8 }
 0x117   : > { %v500_v9 = vld [vmem:[#allocation2 + $0x30] sm:$0xff]  ;;  %v837_v10 = vld [vmem:[%s393_s6] ss:$0 sm:$0xff]  ;;  %v502_v12 = vld [vmem:[#allocation2 + $0x18] sm:$0xff] }
 0x118   : > { %v501_v11 = vld [vmem:[#allocation2] sm:$0xff]  ;;  %v512_v14 = vadd.f32 %v837_v10, %v500_v9  ;;  %v514_v16 = vadd.f32 %v837_v10, %v502_v12  ;;  %v504_v17 = vld [vmem:[#allocation2 + $0x8] sm:$0xff] }
 0x119   : > { %v503_v13 = vld [vmem:[#allocation2 + $0x10] sm:$0xff]  ;;  %v513_v15 = vadd.f32 %v837_v10, %v501_v11  ;;  %v506_v20 = vld [vmem:[#allocation2 + $0x28] sm:$0xff]  ;;  %v516_v21 = vadd.f32 %v837_v10, %v504_v17 }
 0x11a   : > { %v515_v19 = vadd.f32 %v837_v10, %v503_v13  ;;  %520 = vst [vmem:[%s1153_s22] sm:$0xff] %v512_v14  ;;  %v518_v24 = vadd.f32 %v837_v10, %v506_v20 }
 0x11b   : > { %521 = vst [vmem:[%s1153_s22 + $0x8] sm:$0xff] %v513_v15 }
 0x11c   : > { %v505_v18 = vld [vmem:[#allocation2 + $0x20] sm:$0xff]  ;;  %522 = vst [vmem:[%s1153_s22 + $0x10] sm:$0xff] %v514_v16 }
 0x11d   : > { %v507_v22 = vld [vmem:[#allocation2 + $0x38] sm:$0xff]  ;;  %v517_v23 = vadd.f32 %v837_v10, %v505_v18  ;;  %523 = vst [vmem:[%s1153_s22 + $0x18] sm:$0xff] %v515_v19 }
 0x11e   : > { %v519_v25 = vadd.f32 %v837_v10, %v507_v22  ;;  %524 = vst [vmem:[%s1153_s22 + $0x20] sm:$0xff] %v516_v21 }
 0x11f   : > { %525 = vst [vmem:[%s1153_s22 + $0x28] sm:$0xff] %v517_v23 }
 0x120   : > { %526 = vst [vmem:[%s1153_s22 + $0x30] sm:$0xff] %v518_v24 }
 0x121   : > { %527 = vst [vmem:[%s1153_s22 + $0x38] sm:$0xff] %v519_v25 }
 0x122 PF: > { %s678_s17 = sshll.u32 %s952_s20, 3  ;;  %s543_s26 = sshll.u32 %s1153_s22, 4  ;;  %s544_s26 = int_to_ptr.vmem [resolvable:$true] %s543_s26 }
 0x123   : > { %s542_s8 = scalar_lea.hbm %s1254_s3, %s678_s17  ;;  %s529_s29 = scalar_lea.sflag [#allocation6], %s386_s30 }
 0x124   : > { %s545_s9 = sshll.u32 %s542_s8, 4  ;;  %s858_s20 = scalar_lea.hbm %s1254_s3, 128  ;;  %s546_s9 = int_to_ptr.hbm [resolvable:$true] %s545_s9 }
 0x125   : > { %s852_s24 = sshra.s32 %s546_s9, 4  ;;  %s853_s24 = int_to_ptr.hbm [resolvable:$true] %s852_s24 }
 0x126   : > { %s854_s4 = scalar_lea.hbm %s853_s24, 64  ;;  %p859_p12 = scmp.lt.s32.totalorder %s853_s24, %s1254_s3 }
 0x127   : > { %p855_p9 = scmp.ne.s32.totalorder %s853_s24, %s854_s4  ;;  %p860_p13 = scmp.lt.s32.totalorder %s858_s20, %s854_s4 }
 0x129   : > { %p856_p10 = pnand %p855_p9, %p1092_p0  ;;  %p861_p2 = por %p860_p13, %p859_p12 }
 0x12b   : > { %p857_p11 = pneg %p856_p10 }
 0x12d   : > { %p862_p3 = pnand %p861_p2, %p857_p11 }
 0x12f   : > { %865 = shalt.err (!%p862_p3)
}
 0x130   : > { %s967_s22 = smov 128   ;;  %s968_s30 = smov 256  }
 0x131   : > { %s969_s15 = smov 8  }
 0x132   : > { %730 = dma.vmem_to_hbm [thread:$0]  (%p1092_p0), %s544_s26, 1024, %s546_s9, %s529_s29, %s967_s22, %s968_s30, %s969_s15  }
 0x133 PF: > { %p736_p4 = scmp.ge.s32.totalorder %s964_s23, 2  ;;  %s560_s17 = sand.u32 1, %s920_s12  }
 0x134   : > { %s561_s19 = scalar_lea.sflag [#allocation6], %s560_s17 }
 0x135   : > { %p733_p5 = pnand %p736_p4, %p1096_p1 }
 0x137   : > { %p734_p6 = pneg %p733_p5 }
 0x139   : > { %915 = dma.done.wait (%p734_p6), %s561_s19, 1024  }
 0x13a   : > { %917 = vsyncadd (%p734_p6), %s561_s19, 4294966272  ;;  %s16_s23 = sadd.s32 1, %s964_s23   ;;  %s1269_s20 = sld [smem:[#allocation8_spill]] }
 0x13b   : > { %p13_p7 = scmp.ge.s32.totalorder %s16_s23, 6   ;;  %s1270_s28 = sld [smem:[#allocation9_spill]] }
 0x13c   : > { %s1271_s22 = sld [smem:[#allocation10_spill]]  ;;  %s1272_s12 = smov %s924_s13 }
 0x13d   : > { %s1273_s13 = smov %s928_s14  ;;  %s1274_s14 = smov %s1083_s10 }
 0x13e   : > { %s1275_s15 = smov %s936_s16  ;;  %s1276_s16 = smov %s1086_s11 }
 0x13f   : > { %s1277_s17 = smov %s944_s18  ;;  %s1278_s18 = smov %s1073_s5 }
 0x140   : > { %s1279_s19 = smov %s956_s21  ;;  %15 = sbr.rel (!%p13_p7) target bundleno = 10 (0xa), region = 167 }
 0x141   : > { %s1280_s21 = smov %s1270_s28 }
 0x145   :  { %567 = vsyncpa [#allocation6], 1 }
 0x146   :  { %569 = vsyncpa [#allocation6 + $0x1], 1 }

</bundles_post_ra>
